<compile_context>
chip_gen: v5e
topology: v5e:2x2
jax: 0.10.0
libtpu: 0.0.40
codegen_flags: <defaults>
</compile_context>

<pallas_src>
import functools

import jax
import jax.numpy as jnp
from jax.experimental import pallas as pl
from jax.experimental.pallas import tpu as pltpu

_INV_SQRT2 = 0.7071067811865476  # 1/sqrt(2), hoisted constant


# --------------------------------------------------------------------------- #
# Kernel
# --------------------------------------------------------------------------- #
def _mlp_kernel(x_ref, w1_ref, b1_ref, w2_ref, b2_ref, o_ref, acc_ref):
    k = pl.program_id(1)

    @pl.when(k == 0)
    def _init():
        # Seed the accumulator with the fc2 bias so finalize is a pure cast.
        acc_ref[...] = jnp.broadcast_to(b2_ref[...], acc_ref.shape)

    # fc1 hidden chunk: (tm, d_in) @ (d_in, tk)   (weights pre-transposed)
    h = jnp.dot(x_ref[...], w1_ref[...], preferred_element_type=jnp.float32)
    h = h + b1_ref[...]                            # (1, tk) broadcasts over rows
    # exact (erf-based) GELU — matches torch.nn.GELU() default
    h = 0.5 * h * (1.0 + jax.lax.erf(h * _INV_SQRT2))
    # dropout(p=0.0) -> identity
    # partial fc2: (tm, tk) @ (tk, n_pad) accumulated in f32 scratch
    acc_ref[...] += jnp.dot(
        h.astype(w2_ref.dtype), w2_ref[...], preferred_element_type=jnp.float32
    )

    @pl.when(k == pl.num_programs(1) - 1)
    def _finalize():
        o_ref[...] = acc_ref[...].astype(o_ref.dtype)


# --------------------------------------------------------------------------- #
# Tiling / VMEM budgeting
# --------------------------------------------------------------------------- #
def _round_up(x, m):
    return ((x + m - 1) // m) * m


def _vmem_capacity_bytes():
    try:
        info = pltpu.get_tpu_info()
        cap = getattr(info, "vmem_capacity_bytes", None)
        if cap:
            return int(cap)
    except Exception:
        pass
    # Conservative fallback (v7x per-TC capacity) — safe on every generation.
    return 64 * 1024 * 1024


def _vmem_need(tm, tk, d_in, n_pad, itemsize):
    x_blk = tm * d_in * itemsize * 2          # double-buffered input tile
    w1_blk = d_in * tk * itemsize * 2         # double-buffered w1 chunk
    w2_blk = tk * n_pad * itemsize * 2        # double-buffered w2 chunk
    b_blk = (tk + n_pad) * 4 * 2              # biases (f32)
    o_blk = tm * n_pad * 4 * 2                # output tile (<=4B dtype)
    acc = tm * n_pad * 4                      # f32 accumulator scratch
    return x_blk + w1_blk + w2_blk + b_blk + o_blk + acc


def _select_tiles(d_in, d_hid, n_pad, itemsize, vmem_cap):
    """Pick (tm_cap, tk) preferring large token tiles (amortize weight streaming),
    under ~75% of the chip's VMEM capacity."""
    budget = int(vmem_cap * 0.75)
    k_full = _round_up(d_hid, 128)
    best = None
    for tm in (1024, 512, 256, 128, 64, 32, 16, 8):
        for tk in (512, 256, 128):
            tk_c = min(tk, k_full)
            need = _vmem_need(tm, tk_c, d_in, n_pad, itemsize)
            if need <= budget:
                best = (tm, tk_c, need)
                break
        if best is not None:
            break
    if best is None:  # degenerate huge-feature fallback
        tk_c = min(128, k_full)
        best = (8, tk_c, _vmem_need(8, tk_c, d_in, n_pad, itemsize))
    tm, tk, need = best
    vmem_limit = max(32 << 20, need + (8 << 20))
    vmem_limit = min(vmem_limit, max(vmem_cap - (4 << 20), 32 << 20))
    return tm, tk, int(vmem_limit)


# --------------------------------------------------------------------------- #
# One-time parameter preparation (hoisted out of the per-call path)
# --------------------------------------------------------------------------- #
def prepare_mlp_params(w1, b1, w2, b2, *, compute_dtype=jnp.float32):
    """Transpose to (in, out) layout, zero-pad to tile boundaries, cast.
    Inputs use PyTorch nn.Linear layout: w1 (d_hid, d_in), w2 (d_out, d_hid).
    Returns (params, cfg); do this once at load time and reuse."""
    d_hid, d_in = w1.shape
    d_out = w2.shape[0]
    vmem_cap = _vmem_capacity_bytes()
    n_pad = _round_up(d_out, 128)             # lane-dense output stores
    itemsize = jnp.dtype(compute_dtype).itemsize
    tm_cap, tk_eff, vmem_limit = _select_tiles(d_in, d_hid, n_pad, itemsize, vmem_cap)
    k_pad = _round_up(d_hid, tk_eff)

    f32 = jnp.float32
    # Zero pads are exact: padded hidden cols see b1=0 and zeroed w2 rows;
    # padded output cols are sliced off in the wrapper.
    w1t = jnp.zeros((d_in, k_pad), compute_dtype).at[:, :d_hid].set(
        w1.T.astype(compute_dtype))
    b1p = jnp.zeros((1, k_pad), f32).at[:, :d_hid].set(b1.astype(f32))
    w2t = jnp.zeros((k_pad, n_pad), compute_dtype).at[:d_hid, :d_out].set(
        w2.T.astype(compute_dtype))
    b2p = jnp.zeros((1, n_pad), f32).at[:, :d_out].set(b2.astype(f32))

    params = (w1t, b1p, w2t, b2p)
    cfg = dict(tm_cap=tm_cap, tk_eff=tk_eff, d_out=d_out, vmem_limit=vmem_limit)
    return params, cfg


# --------------------------------------------------------------------------- #
# Jitted pallas_call wrapper (takes pre-prepared weights)
# --------------------------------------------------------------------------- #
@functools.partial(
    jax.jit, static_argnames=("tm_cap", "tk_eff", "d_out", "vmem_limit"))
def _mlp_pallas_call(x, w1t, b1p, w2t, b2p, *, tm_cap, tk_eff, d_out, vmem_limit):
    M, d_in = x.shape
    k_pad, n_pad = w2t.shape
    cdtype = w1t.dtype
    sub = 8 if jnp.dtype(cdtype).itemsize == 4 else 16   # sublane packing

    # Token tile: as large as the VMEM budget allows, shrunk for small M.
    tm_eff = min(tm_cap, _round_up(M, sub))
    # Guarantee >=2 token tiles so the "parallel" axis can shard across v7x's
    # two TensorCores (a single extra grid step is negligible on v5e/v6e).
    if M > sub and _round_up(M, tm_eff) // tm_eff < 2:
        tm_eff = max(sub, _round_up(-(-M // 2), sub))
    m_pad = _round_up(M, tm_eff)

    xp = x.astype(cdtype)
    if m_pad != M:  # skip the padding copy when already aligned
        xp = jnp.zeros((m_pad, d_in), cdtype).at[:M].set(xp)

    grid = (m_pad // tm_eff, k_pad // tk_eff)

    out = pl.pallas_call(
        _mlp_kernel,
        out_shape=jax.ShapeDtypeStruct((m_pad, n_pad), x.dtype),
        grid_spec=pltpu.PrefetchScalarGridSpec(
            num_scalar_prefetch=0,
            grid=grid,
            in_specs=[
                pl.BlockSpec((tm_eff, d_in), lambda i, k: (i, 0)),   # x tile
                pl.BlockSpec((d_in, tk_eff), lambda i, k: (0, k)),   # w1^T chunk
                pl.BlockSpec((1, tk_eff), lambda i, k: (0, k)),      # b1 chunk
                pl.BlockSpec((tk_eff, n_pad), lambda i, k: (k, 0)),  # w2^T chunk
                pl.BlockSpec((1, n_pad), lambda i, k: (0, 0)),       # b2
            ],
            out_specs=pl.BlockSpec((tm_eff, n_pad), lambda i, k: (i, 0)),
            scratch_shapes=[pltpu.VMEM((tm_eff, n_pad), jnp.float32)],
        ),
        compiler_params=pltpu.CompilerParams(
            # token axis parallel (megacore on v7x), hidden axis is a reduction
            dimension_semantics=("parallel", "arbitrary"),
            vmem_limit_bytes=vmem_limit,
        ),
    )(xp, w1t, b1p, w2t, b2p)

    if m_pad != M or n_pad != d_out:  # skip slice when already aligned
        out = out[:M, :d_out]
    return out


def mlp_pallas_prepared(x, params, cfg):
    """x: (..., d_in) -> (..., d_out) using pre-prepared weights."""
    lead = x.shape[:-1]
    d_in = x.shape[-1]
    x2 = x.reshape(-1, d_in)
    out = _mlp_pallas_call(x2, *params, **cfg)
    return out.reshape(*lead, -1)


def mlp_pallas(x, w1, b1, w2, b2, *, compute_dtype=jnp.float32):
    """Convenience one-shot wrapper (weights prepared on every call — prefer
    prepare_mlp_params + mlp_pallas_prepared in real use)."""
    params, cfg = prepare_mlp_params(w1, b1, w2, b2, compute_dtype=compute_dtype)
    return mlp_pallas_prepared(x, params, cfg)


def mlp_reference(x, w1, b1, w2, b2):
    h = x @ w1.T + b1
    h = jax.nn.gelu(h, approximate=False)
    return h @ w2.T + b2


# TODO(synk): nn.Dropout with p>0 in training mode (RNG masking) is not
# implemented; the reference module uses drop=0.0, which is an identity.

if __name__ == "__main__":
    # Small shapes consistent with the module: tokens = batch*seq, feature dims.
    batch, seq = 2, 8
    in_features = 32
    hidden_features = 128
    out_features = 32

    key = jax.random.PRNGKey(0)
    kx, k1, k2, k3, k4 = jax.random.split(key, 5)

    # Input shaped like a transformer block input (B, N, C).
    x_bnc = jax.random.normal(kx, (batch, seq, in_features), dtype=jnp.float32)

    # Deterministic parameter init (PyTorch Linear layout: (out, in)).
    w1 = jax.random.normal(k1, (hidden_features, in_features), jnp.float32) * 0.05
    b1 = jax.random.normal(k2, (hidden_features,), jnp.float32) * 0.05
    w2 = jax.random.normal(k3, (out_features, hidden_features), jnp.float32) * 0.05
    b2 = jax.random.normal(k4, (out_features,), jnp.float32) * 0.05

    # One-time weight prep, then run the kernel.
    params, cfg = prepare_mlp_params(w1, b1, w2, b2, compute_dtype=jnp.float32)
    out = mlp_pallas_prepared(x_bnc, params, cfg)
    out = jax.block_until_ready(out)

    ref = mlp_reference(x_bnc.reshape(-1, in_features), w1, b1, w2, b2).reshape(
        batch, seq, out_features)
    assert out.shape == (batch, seq, out_features)
    assert jnp.allclose(out, ref, atol=1e-5, rtol=1e-5), "mismatch vs reference"

    print("KERNEL_OK")
</pallas_src>

<mosaic_0001>
module attributes {stable_mosaic.version = 11 : i64} {
  func.func @_mlp_kernel(%arg0: i32, %arg1: i32, %arg2: memref<8x32xf32, #tpu.memory_space<vmem>>, %arg3: memref<32x128xf32, #tpu.memory_space<vmem>>, %arg4: memref<1x128xf32, #tpu.memory_space<vmem>>, %arg5: memref<128x128xf32, #tpu.memory_space<vmem>>, %arg6: memref<1x128xf32, #tpu.memory_space<vmem>>, %arg7: memref<8x128xf32, #tpu.memory_space<vmem>>, %arg8: memref<8x128xf32, #tpu.memory_space<vmem>>) attributes {dimension_semantics = [#tpu.dimension_semantics<parallel>, #tpu.dimension_semantics<arbitrary>], iteration_bounds = array<i64: 2, 1>, scalar_prefetch = 0 : i64, scratch_operands = 1 : i64, tpu.core_type = #tpu.core_type<tc>, window_params = [{transform_indices = @transform_0, window_bounds = array<i64: 8, 32>}, {transform_indices = @transform_1, window_bounds = array<i64: 32, 128>}, {transform_indices = @transform_2, window_bounds = array<i64: 1, 128>}, {transform_indices = @transform_3, window_bounds = array<i64: 128, 128>}, {pipeline_mode = #tpu.pipeline_mode<synchronous>, transform_indices = @transform_4, window_bounds = array<i64: 1, 128>}, {transform_indices = @transform_5, window_bounds = array<i64: 8, 128>}]} {
    %c0_i32 = arith.constant 0 : i32
    %0 = arith.cmpi eq, %arg1, %c0_i32 : i32
    %1 = arith.extui %0 : i1 to i32
    %c0_i32_0 = arith.constant 0 : i32
    %2 = arith.cmpi ne, %1, %c0_i32_0 : i32
    scf.if %2 {
      %c0_18 = arith.constant 0 : index
      %c0_19 = arith.constant 0 : index
      %25 = vector.load %arg6[%c0_18, %c0_19] : memref<1x128xf32, #tpu.memory_space<vmem>>, vector<1x128xf32>
      %26 = vector.shape_cast %25 : vector<1x128xf32> to vector<1x128xf32>
      %27 = vector.broadcast %26 : vector<1x128xf32> to vector<8x128xf32>
      %c0_20 = arith.constant 0 : index
      %c0_21 = arith.constant 0 : index
      %28 = vector.load %arg8[%c0_20, %c0_21] : memref<8x128xf32, #tpu.memory_space<vmem>>, vector<8x128xf32>
      tpu.vector_store %arg8[%c0_20, %c0_21], %27 {strides = array<i32>} : memref<8x128xf32, #tpu.memory_space<vmem>>, vector<8x128xf32>,
    } else {
    }
    %c0 = arith.constant 0 : index
    %c0_1 = arith.constant 0 : index
    %3 = vector.load %arg2[%c0, %c0_1] : memref<8x32xf32, #tpu.memory_space<vmem>>, vector<8x32xf32>
    %c0_2 = arith.constant 0 : index
    %c0_3 = arith.constant 0 : index
    %4 = vector.load %arg3[%c0_2, %c0_3] : memref<32x128xf32, #tpu.memory_space<vmem>>, vector<32x128xf32>
    %cst = arith.constant dense<0.000000e+00> : vector<8x128xf32>
    %5 = tpu.matmul %3, %4, %cst {dimension_numbers = #tpu.dot_dimension_numbers<[1], [0], [0], [1], [0, 0, 1, 1], [], []>} : vector<8x32xf32>, vector<32x128xf32>, vector<8x128xf32> -> vector<8x128xf32>
    %c0_4 = arith.constant 0 : index
    %c0_5 = arith.constant 0 : index
    %6 = vector.load %arg4[%c0_4, %c0_5] : memref<1x128xf32, #tpu.memory_space<vmem>>, vector<1x128xf32>
    %7 = vector.broadcast %6 : vector<1x128xf32> to vector<8x128xf32>
    %8 = arith.addf %5, %7 : vector<8x128xf32>
    %cst_6 = arith.constant 5.000000e-01 : f32
    %9 = vector.broadcast %cst_6 : f32 to vector<8x128xf32>
    %10 = arith.mulf %9, %8 : vector<8x128xf32>
    %cst_7 = arith.constant 0.707106769 : f32
    %11 = vector.broadcast %cst_7 : f32 to vector<8x128xf32>
    %12 = arith.mulf %8, %11 : vector<8x128xf32>
    %13 = math.erf %12 : vector<8x128xf32>
    %cst_8 = arith.constant 1.000000e+00 : f32
    %14 = vector.broadcast %cst_8 : f32 to vector<8x128xf32>
    %15 = arith.addf %14, %13 : vector<8x128xf32>
    %16 = arith.mulf %10, %15 : vector<8x128xf32>
    %c0_9 = arith.constant 0 : index
    %c0_10 = arith.constant 0 : index
    %17 = vector.load %arg8[%c0_9, %c0_10] : memref<8x128xf32, #tpu.memory_space<vmem>>, vector<8x128xf32>
    %c0_11 = arith.constant 0 : index
    %c0_12 = arith.constant 0 : index
    %18 = vector.load %arg5[%c0_11, %c0_12] : memref<128x128xf32, #tpu.memory_space<vmem>>, vector<128x128xf32>
    %cst_13 = arith.constant dense<0.000000e+00> : vector<8x128xf32>
    %19 = tpu.matmul %16, %18, %cst_13 {dimension_numbers = #tpu.dot_dimension_numbers<[1], [0], [0], [1], [0, 0, 1, 1], [], []>} : vector<8x128xf32>, vector<128x128xf32>, vector<8x128xf32> -> vector<8x128xf32>
    %20 = arith.addf %17, %19 : vector<8x128xf32>
    %c0_14 = arith.constant 0 : index
    %c0_15 = arith.constant 0 : index
    %21 = vector.load %arg8[%c0_14, %c0_15] : memref<8x128xf32, #tpu.memory_space<vmem>>, vector<8x128xf32>
    tpu.vector_store %arg8[%c0_14, %c0_15], %20 {strides = array<i32>} : memref<8x128xf32, #tpu.memory_space<vmem>>, vector<8x128xf32>,
    %c0_i32_16 = arith.constant 0 : i32
    %22 = arith.cmpi eq, %arg1, %c0_i32_16 : i32
    %23 = arith.extui %22 : i1 to i32
    %c0_i32_17 = arith.constant 0 : i32
    %24 = arith.cmpi ne, %23, %c0_i32_17 : i32
    scf.if %24 {
      %c0_18 = arith.constant 0 : index
      %c0_19 = arith.constant 0 : index
      %25 = vector.load %arg8[%c0_18, %c0_19] : memref<8x128xf32, #tpu.memory_space<vmem>>, vector<8x128xf32>
      %c0_20 = arith.constant 0 : index
      %c0_21 = arith.constant 0 : index
      %26 = vector.load %arg7[%c0_20, %c0_21] : memref<8x128xf32, #tpu.memory_space<vmem>>, vector<8x128xf32>
      tpu.vector_store %arg7[%c0_20, %c0_21], %25 {strides = array<i32>} : memref<8x128xf32, #tpu.memory_space<vmem>>, vector<8x128xf32>,
    } else {
    }
    return
  }
  func.func @transform_0(%arg0: i32, %arg1: i32) -> (i32, i32) {
    %c0_i32 = arith.constant 0 : i32
    %c0_i32_0 = arith.constant 0 : i32
    return %arg0, %c0_i32 : i32, i32
  }
  func.func @transform_1(%arg0: i32, %arg1: i32) -> (i32, i32) {
    %c0_i32 = arith.constant 0 : i32
    %c0_i32_0 = arith.constant 0 : i32
    return %c0_i32, %arg1 : i32, i32
  }
  func.func @transform_2(%arg0: i32, %arg1: i32) -> (i32, i32) {
    %c0_i32 = arith.constant 0 : i32
    %c0_i32_0 = arith.constant 0 : i32
    return %c0_i32, %arg1 : i32, i32
  }
  func.func @transform_3(%arg0: i32, %arg1: i32) -> (i32, i32) {
    %c0_i32 = arith.constant 0 : i32
    %c0_i32_0 = arith.constant 0 : i32
    return %arg1, %c0_i32 : i32, i32
  }
  func.func @transform_4(%arg0: i32, %arg1: i32) -> (i32, i32) {
    %c0_i32 = arith.constant 0 : i32
    %c0_i32_0 = arith.constant 0 : i32
    %c0_i32_1 = arith.constant 0 : i32
    return %c0_i32, %c0_i32_0 : i32, i32
  }
  func.func @transform_5(%arg0: i32, %arg1: i32) -> (i32, i32) {
    %c0_i32 = arith.constant 0 : i32
    %c0_i32_0 = arith.constant 0 : i32
    return %arg0, %c0_i32 : i32, i32
  }
}

</mosaic_0001>

<bundles_post_ra>
// kernel: _mlp_pallas_call.1
= control target key start
LH: loop header
LB: loop body
LE: loop exit
PB: predicated region body
PF: predicated region fallthrough
CT: control target
= control target key end

     0   :  { %10 = vsyncpa [#allocation4], 0  ;;  %s1051_s0 = inlined_call_operand.hbm [shape: f32[16,32], index: 0, kind: input, shape index: {}]   ;;  %s1052_s1 = inlined_call_operand.hbm [shape: f32[32,128], index: 1, kind: input, shape index: {}]   ;;  %s1053_s2 = inlined_call_operand.vmem [shape: f32[1,128], index: 2, kind: input, shape index: {}]   ;;  %s1054_s3 = inlined_call_operand.hbm [shape: f32[128,128], index: 3, kind: input, shape index: {}]   ;;  %s1055_s4 = inlined_call_operand.vmem [shape: f32[1,128], index: 4, kind: input, shape index: {}]   ;;  %s1056_s5 = inlined_call_operand.hbm [shape: f32[16,128], index: 5, kind: output, shape index: {}]  }
   0x1   :  { %12 = vsyncpa [#allocation4 + $0x1], 0 }
   0x2   :  { %13 = vsyncpa [#allocation7], 0 }
   0x3   :  { %14 = vsyncpa [#allocation5], 0 }
   0x4   :  { %16 = vsyncpa [#allocation5 + $0x1], 0  ;;  %s897_s18 = smov 0   ;;  %s899_s19 = smov 0  }
   0x5   :  { %s901_s20 = smov 0   ;;  %s903_s21 = smov 0  }
   0x6   :  { %s905_s22 = smov 0   ;;  %s907_s23 = smov 0  }
   0x7 LB: > { %s576_s24 = sadd.s32 4294967295, %s861_s23   ;;  %p578_p0 = scmp.ge.s32.totalorder %s861_s23, 1  ;;  %s861_s23 = sphi %s907_s23, %s22_s23   ;;  %s857_s22 = sphi %s905_s22, %s1066_s22   ;;  %s853_s21 = sphi %s903_s21, %s1065_s21   ;;  %s849_s20 = sphi %s901_s20, %s1064_s20   ;;  %s845_s19 = sphi %s899_s19, %s1063_s19   ;;  %s841_s18 = sphi %s897_s18, %s1062_s18  }
   0x8   : > { %p931_p1 = scmp.eq.s32.totalorder %s576_s24, 0  ;;  %p190_p2 = scmp.lt.s32.totalorder %s861_s23, 3 }
   0x9   : > { %s203_s28 = sshll.u32 %s1052_s1, 4  ;;  %s863_s30 = smov [#allocation6]   ;;  %s204_s28 = int_to_ptr.hbm [resolvable:$true] %s203_s28 }
   0xa   : > { %p939_p3 = pnand %p578_p0, %p190_p2  ;;  %s205_s6 = sshll.u32 %s863_s30, 4  ;;  %s206_s6 = int_to_ptr.vmem [resolvable:$true] %s205_s6 }
   0xb   : > { %p582_p6 = scmp.ge.s32.totalorder %s861_s23, 2  ;;  %s226_s9 = sshll.u32 %s1054_s3, 4  ;;  %s227_s9 = int_to_ptr.hbm [resolvable:$true] %s226_s9 }
   0xc   : > { %p608_p4 = pneg %p939_p3  ;;  %s864_s10 = smov 128  }
   0xd   : > { %s865_s11 = smov 8   ;;  %s866_s12 = smov [#allocation8]  }
   0xe   : > { %p609_p5 = pnand %p608_p4, %p931_p1  ;;  %s228_s13 = sshll.u32 %s866_s12, 4  ;;  %s229_s13 = int_to_ptr.vmem [resolvable:$true] %s228_s13 }
   0xf   : > { %s34_s14 = sadd.s32 1, %s857_s22  ;;  %s577_s15 = sadd.s32 4294967294, %s861_s23  }
  0x10   : > { %611 = dma.hbm_to_vmem [thread:$0]  (!%p609_p5), %s204_s28, 512, %s206_s6, [#allocation7], %s864_s10, %s864_s10, %s865_s11  }
  0x11   : > { %614 = dma.hbm_to_vmem [thread:$0]  (!%p609_p5), %s227_s9, 2048, %s229_s13, [#allocation7], %s864_s10, %s864_s10, %s865_s11  }
  0x12   : > { %p36_p7 = scmp.ge.s32.totalorder %s34_s14, 2  ;;  %s41_s16 = sadd.s32 1, %s849_s20 }
  0x13   : > { %p48_p8 = scmp.ne.s32.totalorder %s849_s20, %s845_s19  ;;  %p49_p9 = scmp.eq.s32.totalorder %s861_s23, 0 }
  0x14   : > { %s1068_s14 = smov (%p36_p7, %s34_s14), 0  ;;  %p54_p10 = scmp.ne.s32.totalorder %s845_s19, %s841_s18 }
  0x15   : > { %s38_s17 = ssub.s32 %s857_s22, %s1068_s14  ;;  %p177_p11 = scmp.eq.s32.totalorder %s576_s24, 1 }
  0x16   : > { %p39_p12 = scmp.eq.s32.totalorder %s38_s17, 0  ;;  %p967_p13 = por %p931_p1, %p54_p10 }
  0x17   : > { %p971_p0 = por %p177_p11, %p48_p8  ;;  %p183_p2 = scmp.eq.s32.totalorder %s577_s15, 1 }
  0x18   : > { %s976_s28 = scalar_select %p39_p12, %s849_s20, %s41_s16  }
  0x19   : > { %p50_p4 = por %p49_p9, %p48_p8  ;;  %p978_p5 = por %p183_p2, %p54_p10 }
  0x1a   : > { %s245_s6 = sand.u32 1, %s849_s20   ;;  %s584_s24 = sshll.u32 %s857_s22, 3 }
  0x1b   : > { %p625_p7 = scmp.lt.s32.totalorder %s861_s23, 2  ;;  %s583_s7 = sshll.u32 %s245_s6, 3 }
  0x1c   : > { %s253_s10 = scalar_lea.hbm %s1051_s0, %s584_s24  ;;  %s249_s12 = scalar_lea.vmem [#allocation3], %s583_s7 }
  0x1d   : > { %s255_s11 = sshll.u32 %s253_s10, 4  ;;  %s257_s13 = sshll.u32 %s249_s12, 4  ;;  %s256_s11 = int_to_ptr.hbm [resolvable:$true] %s255_s11  ;;  %s258_s13 = int_to_ptr.vmem [resolvable:$true] %s257_s13 }
  0x1e   : > { %p616_p11 = pnand %p625_p7, %p50_p4  ;;  %s246_s15 = scalar_lea.sflag [#allocation4], %s245_s6 }
  0x1f   : > { %266 = sbr.rel (%p939_p3) target bundleno = 357 (0x165), region = 40  ;;  %s991_s16 = sand.u32 (!%p939_p3), 1, %s845_s19  }
  0x20   : > { %618 = dma.hbm_to_vmem [thread:$0]  (!%p616_p11), %s256_s11, 128, %s258_s13, %s246_s15  }
  0x21   : > { %s586_s17 = sshll.u32 (!%p939_p3), %s991_s16, 3  ;;  %s269_s24 = scalar_lea.sflag (!%p939_p3), [#allocation4], %s991_s16 }
  0x22   : > { %s272_s7 = scalar_lea.vmem (!%p939_p3), [#allocation3], %s586_s17 }
  0x24   : > { %828 = dma.done.wait (%p967_p13), %s269_s24, 128  }
  0x25   : > { %830 = vsyncadd (%p967_p13), %s269_s24, 4294967168 }
  0x26   : > { %832 = dma.done.wait (%p931_p1), [#allocation7], 2560  }
  0x27   : > { %834 = vsyncadd (%p931_p1), [#allocation7], 4294964736  ;;  %v330_v0 = vld [vmem:[#allocation6 + $0x18] sm:$0xff]  ;;  %v329_v1 = vld [vmem:[#allocation6 + $0x10] sm:$0xff]  ;;  %vm335_vm0 = vcmask 261120   ;;  %s593_s26 = sshll.u32 %s853_s21, 3 }
  0x28   : > { %351 = vmatpush.msra.mxu0 %v330_v0  ;;  %v328_v2 = vld [vmem:[#allocation6 + $0x8] sm:$0xff]  ;;  %v327_v3 = vld [vmem:[#allocation6] sm:$0xff]  ;;  %v326_v4 = vld [vmem:[%s272_s7] sm:$0xff]  ;;  %s458_s9 = scalar_lea.hbm %s1056_s5, %s593_s26  ;;  %s312_s12 = scalar_lea.vmem [#allocation9], %s586_s17 }
  0x29   : > { %v419_v5 = vld [vmem:[#allocation8 + $0x78] sm:$0xff]  ;;  %v418_v6 = vld [vmem:[#allocation8 + $0x70] sm:$0xff]  ;;  %v417_v7 = vld [vmem:[#allocation8 + $0x68] sm:$0xff]  ;;  %s460_s13 = sshll.u32 %s312_s12, 4  ;;  %s462_s15 = sshll.u32 %s458_s9, 4  ;;  %s461_s13 = int_to_ptr.vmem [resolvable:$true] %s460_s13  ;;  %s463_s15 = int_to_ptr.hbm [resolvable:$true] %s462_s15 }
  0x2a   : > { %352 = vmatpush.msra.mxu0 %v329_v1  ;;  %420 = vmatpush.msra.mxu1 %v419_v5  ;;  %v416_v8 = vld [vmem:[#allocation8 + $0x60] sm:$0xff]  ;;  %v681_v9 = vld [vmem:[%s1053_s2] ss:$0 sm:$0xff]  ;;  %v415_v10 = vld [vmem:[#allocation8 + $0x58] sm:$0xff]  ;;  %s448_s24 = scalar_lea.sflag [#allocation5], %s991_s16  ;;  %s789_s21 = sshra.s32 %s463_s15, 4  ;;  %s790_s21 = int_to_ptr.hbm [resolvable:$true] %s789_s21 }
  0x2b   : > { %v414_v11 = vld [vmem:[#allocation8 + $0x50] sm:$0xff]  ;;  %v413_v13 = vld [vmem:[#allocation8 + $0x48] sm:$0xff]  ;;  %v412_v15 = vld [vmem:[#allocation8 + $0x40] sm:$0xff]  ;;  %s791_s7 = scalar_lea.hbm %s790_s21, 8  ;;  %s795_s26 = scalar_lea.hbm %s1056_s5, 16 }
  0x2c   : > { %353 = vmatpush.msra.mxu0 %v328_v2  ;;  %421 = vmatpush.msra.mxu1 %v418_v6  ;;  %v411_v17 = vld [vmem:[#allocation8 + $0x38] sm:$0xff]  ;;  %v410_v19 = vld [vmem:[#allocation8 + $0x30] sm:$0xff]  ;;  %v409_v21 = vld [vmem:[#allocation8 + $0x28] sm:$0xff]  ;;  %p792_p1 = scmp.ne.s32.totalorder %s790_s21, %s791_s7  ;;  %p796_p9 = scmp.lt.s32.totalorder %s790_s21, %s1056_s5 }
  0x2d   : > { %v408_v24 = vld [vmem:[#allocation8 + $0x20] sm:$0xff]  ;;  %v407_v27 = vld [vmem:[#allocation8 + $0x18] sm:$0xff]  ;;  %v406_v30 = vld [vmem:[#allocation8 + $0x10] sm:$0xff]  ;;  %p797_p10 = scmp.lt.s32.totalorder %s795_s26, %s791_s7 }
  0x2e   : > { %354 = vmatpush.msra.mxu0 %v327_v3  ;;  %422 = vmatpush.msra.mxu1 %v417_v7  ;;  %v405_v33 = vld [vmem:[#allocation8 + $0x8] sm:$0xff]  ;;  %v404_v35 = vld [vmem:[#allocation8] sm:$0xff]  ;;  %v682_v63 = vld [vmem:[%s1055_s4] ss:$0 sm:$0xff]  ;;  %p793_p3 = pnand %p792_p1, %p971_p0 }
  0x2f   : > { %590 = vmatmul.msk.f32.vlgmr.msra.gmra.mxu0 %vm335_vm0, %v326_v4  ;;  %p798_p12 = por %p797_p10, %p796_p9 }
  0x30   : > { %423 = vmatpush.msra.mxu1 %v416_v8  ;;  %p794_p8 = pneg %p793_p3 }
  0x32   : > { %424 = vmatpush.msra.mxu1 %v415_v10  ;;  %p799_p13 = pnand %p798_p12, %p794_p8 }
  0x34   : > { %425 = vmatpush.msra.mxu1 %v414_v11 }
  0x36   : > { %426 = vmatpush.msra.mxu1 %v413_v13 }
  0x38   : > { %427 = vmatpush.msra.mxu1 %v412_v15 }
  0x3a   : > { %428 = vmatpush.msra.mxu1 %v411_v17 }
  0x3c   : > { %429 = vmatpush.msra.mxu1 %v410_v19 }
  0x3e   : > { %430 = vmatpush.msra.mxu1 %v409_v21 }
  0x40   : > { %431 = vmatpush.msra.mxu1 %v408_v24 }
  0x42   : > { %432 = vmatpush.msra.mxu1 %v407_v27 }
  0x44   : > { %433 = vmatpush.msra.mxu1 %v406_v30 }
  0x46   : > { %434 = vmatpush.msra.mxu1 %v405_v33 }
  0x48   : > { %435 = vmatpush.msra.mxu1 %v404_v35 }
  0xac   : > { %v356_v12 = vpop.f32.mrf.mxu0 }
  0xad   : > { %v357_v14 = vadd.f32 %v681_v9, %v356_v12 }
  0xaf   : > { %v360_v16 = vmul.f32 0.70710677, %v357_v14  ;;  %v359_v60 = vmul.f32 0.5, %v357_v14 }
  0xb1   : > { %v361_v18 = vmul.f32 %v360_v16, %v360_v16 }
  0xb3   : > { %v362_v20 = vmin.f32 %v361_v18, 16.0 }
  0xb5   : > { %v363_v22 = vmul.f32 2.1237322e-06, %v362_v20  ;;  %v374_v23 = vmul.f32 3.8918573e-05, %v362_v20 }
  0xb7   : > { %v364_v25 = vadd.f32 0.00028619796, %v363_v22  ;;  %v375_v26 = vadd.f32 0.001143296, %v374_v23 }
  0xb9   : > { %v365_v28 = vmul.f32 %v364_v25, %v362_v20  ;;  %v376_v29 = vmul.f32 %v375_v26, %v362_v20 }
  0xbb   : > { %v377_v31 = vadd.f32 0.014752088, %v376_v29  ;;  %v366_v32 = vadd.f32 0.0036580483, %v365_v28 }
  0xbd   : > { %v378_v34 = vmul.f32 %v377_v31, %v362_v20  ;;  %v367_v37 = vmul.f32 %v366_v32, %v362_v20 }
  0xbf   : > { %v379_v36 = vadd.f32 0.112945676, %v378_v34  ;;  %v368_v40 = vadd.f32 0.05243302, %v367_v37 }
  0xc1   : > { %v380_v38 = vmul.f32 %v379_v36, %v362_v20  ;;  %v369_v43 = vmul.f32 %v368_v40, %v362_v20 }
  0xc3   : > { %v381_v39 = vadd.f32 0.4994258, %v380_v38  ;;  %v370_v44 = vadd.f32 0.18741608, %v369_v43 }
  0xc5   : > { %v382_v41 = vmul.f32 %v381_v39, %v362_v20  ;;  %v371_v46 = vmul.f32 %v370_v44, %v362_v20 }
  0xc7   : > { %v383_v42 = vadd.f32 1.0, %v382_v41  ;;  %v372_v50 = vadd.f32 1.1283791, %v371_v46 }
  0xc9   : > { %683 = vrcp.f32 %v383_v42  ;;  %v395_v49 = vand.u32 2147483648, %v383_v42  ;;  %v393_v52 = vand.u32 2147483647, %v383_v42  ;;  %vm389_vm2 = vweird.f32 %v383_v42 }
  0xca   : > { %v373_v55 = vmul.f32 %v372_v50, %v360_v16 }
  0xcb   : > { %v396_v54 = vor.u32 1.1754944e-38, %v395_v49  ;;  %vm394_vm4 = vcmp.eq.f32.partialorder %v393_v52, 8.507059e+37 }
  0xcf   : > { %v684_v45 = vpop.eup %683 }
  0xd0   : > { %v385_v47 = vmul.f32 %v684_v45, %v383_v42  ;;  %vm390_vm1 = vweird.f32 %v684_v45 }
  0xd1   : > { %vm391_vm3 = vmor %vm389_vm2, %vm390_vm1 }
  0xd2   : > { %v386_v48 = vsub.f32 1.0, %v385_v47 }
  0xd4   : > { %v387_v51 = vmul.f32 %v684_v45, %v386_v48 }
  0xd6   : > { %v388_v53 = vadd.f32 %v684_v45, %v387_v51 }
  0xd8   : > { %v392_v56 = vsel %vm391_vm3, %v684_v45, %v388_v53 }
  0xd9   : > { %v397_v57 = vsel %vm394_vm4, %v396_v54, %v392_v56 }
  0xda   : > { %v398_v58 = vmul.f32 %v397_v57, %v373_v55 }
  0xdc   : > { %v591_v59 = vclamps-f32 %v398_v58, 1.0 }
  0xde   : > { %v401_v61 = vadd.f32 1.0, %v591_v59 }
  0xe0   : > { %v402_v62 = vmul.f32 %v401_v61, %v359_v60 }
  0xe2   : > { %436 = vmatmul.f32.vlgmr.msra.gmra.mxu1 %v402_v62 }
 0x15f   : > { %v437_v0 = vpop.f32.mrf.mxu1 }
 0x160   : > { %v440_v1 = vadd.f32 %v682_v63, %v437_v0 }
 0x162   : > { %446 = vst [vmem:[%s312_s12] sm:$0xff] %v440_v1 }
 0x163   : > { %802 = shalt.err (!%p799_p13)
}
 0x164   : > { %606 = dma.vmem_to_hbm [thread:$0]  (%p971_p0), %s461_s13, 128, %s463_s15, %s448_s24  }
 0x165 PF: > { %s474_s16 = sand.u32 1, %s841_s18   ;;  %p620_p2 = pnand %p582_p6, %p978_p5 }
 0x166   : > { %s475_s8 = scalar_lea.sflag [#allocation5], %s474_s16 }
 0x167   : > { %p621_p4 = pneg %p620_p2 }
 0x169   : > { %836 = dma.done.wait (%p621_p4), %s475_s8, 128  }
 0x16a   : > { %838 = vsyncadd (%p621_p4), %s475_s8, 4294967168  ;;  %s22_s23 = sadd.s32 1, %s861_s23   ;;  %s1062_s18 = smov %s845_s19 }
 0x16b   : > { %p19_p7 = scmp.ge.s32.totalorder %s22_s23, 4   ;;  %s1063_s19 = smov %s849_s20 }
 0x16c   : > { %s1064_s20 = smov %s976_s28  ;;  %s1065_s21 = smov %s857_s22 }
 0x16d   : > { %s1066_s22 = smov %s1068_s14  ;;  %21 = sbr.rel (!%p19_p7) target bundleno = 7 (0x7), region = 106 }
 0x172   :  { %481 = vsyncpa [#allocation4], 1 }
 0x173   :  { %483 = vsyncpa [#allocation4 + $0x1], 1 }
 0x174   :  { %484 = vsyncpa [#allocation7], 1 }
 0x175   :  { %485 = vsyncpa [#allocation5], 1 }
 0x176   :  { %487 = vsyncpa [#allocation5 + $0x1], 1 }

</bundles_post_ra>
